<compile_context>
chip_gen: v5e
topology: v5e:2x2
jax: 0.10.0
libtpu: 0.0.40
codegen_flags: <defaults>
</compile_context>

<pallas_src>
import jax
import jax.numpy as jnp
import numpy as np
from jax.experimental import pallas as pl
from jax.experimental.pallas import tpu as pltpu


def _gnn_decoder_kernel(q_ref, v_ref, adj_ref, smask_ref, w_ref, out_ref):
    """One batch tile: row softmax over N, masked-blend reduction, fused matmul."""
    adj = adj_ref[...].astype(jnp.float32)        # (TB, N)
    s = smask_ref[...].astype(jnp.float32)        # (TB, N)

    # Row softmax over the N context nodes (kept in f32; v5e has no bf16 VPU).
    m = jnp.max(adj, axis=-1, keepdims=True)
    e = jnp.exp(adj - m)
    a = e * pl.reciprocal(jnp.sum(e, axis=-1, keepdims=True), approx=False)

    # Per-(b, n) scalar coefficients of the two relation branches.
    c0 = a * s                                    # a * s_mask
    c1 = a - c0                                   # a * (1 - s_mask)

    # Weighted reductions over N.  V stays in its storage dtype (e.g. bf16);
    # the multiply promotes to f32, so accumulation is f32 without first
    # materializing an f32 copy of the whole (TB, N, D) tile.
    v = v_ref[...]
    g0 = jnp.sum(c0[..., None] * v, axis=1)       # (TB, D) f32
    g1 = jnp.sum(c1[..., None] * v, axis=1)       # (TB, D) f32

    # Single fused MXU matmul: [g0 | g1] @ [[Wr0.T], [Wr1.T]] -> (TB, D).
    g = jnp.concatenate(
        [g0.astype(w_ref.dtype), g1.astype(w_ref.dtype)], axis=-1)
    ctx = jnp.dot(g, w_ref[...], preferred_element_type=jnp.float32)

    out_ref[...] = (q_ref[...].astype(jnp.float32) + ctx).astype(out_ref.dtype)


def fuse_gnn_decoder_weights(Wr0, Wr1):
    """Stack Wr0.T over Wr1.T -> (2*D, D) so both projections are one matmul.

    Wr0 / Wr1 are nn.Linear weights in PyTorch (D_out, D_in) layout.  Build
    this once per model and reuse it across forward calls; keep it in bf16 for
    bandwidth-bound deployments.
    """
    Wr0 = jnp.asarray(Wr0)
    Wr1 = jnp.asarray(Wr1)
    return jnp.concatenate([Wr0.T, Wr1.T], axis=0)


def _vmem_capacity_bytes():
    """Per-core VMEM capacity; conservative fallback = 64 MiB (v7x)."""
    try:
        cap = getattr(pltpu.get_tpu_info(), "vmem_capacity_bytes", None)
        if cap:
            return int(cap)
    except Exception:
        pass
    return 64 * 1024 * 1024


def _default_batch_tile(B, N, D, v_itemsize, resident_w_bytes):
    """Largest multiple-of-8 row tile that fits the double-buffered VMEM budget."""
    if B <= 8:
        return B
    budget = int(_vmem_capacity_bytes() * 0.70) - 2 * resident_w_bytes
    # Per batch row, double-buffered pipeline stages: V dominates; Q, adj,
    # s_mask and the output block are small.
    per_row = 2 * (N * D * v_itemsize + 2 * D * 4 + 2 * N * 4)
    tb = budget // max(per_row, 1)
    tb = min(int(tb), 1024)
    # Keep >= 2 grid steps so dimension_semantics=("parallel",) can shard the
    # batch axis across TensorCores (v7x has 2 TCs per chip).
    tb = min(tb, (B + 1) // 2)
    tb = max(8, (tb // 8) * 8)
    return min(tb, B)


def gnn_decoder(Q, K, V, adj, s_mask, Wr0, Wr1, *, batch_tile=None):
    """Pallas GNN_decoder forward.

    Q (B, D), K (B, N, D) [unused, kept for API parity], V (B, N, D),
    adj (B, N), s_mask (B, N).  Wr0 / Wr1 are PyTorch nn.Linear weights of
    shape (D_out, D_in).  For HBM-bound deployments store Q/V (and the fused
    weight) in bf16; the kernel accumulates in f32 regardless.
    """
    del K  # K is not used by GNN_decoder.forward
    B, N, D = V.shape
    w_fused = fuse_gnn_decoder_weights(Wr0, Wr1)           # (2*D, D)

    if batch_tile is None:
        tb = _default_batch_tile(B, N, D, V.dtype.itemsize,
                                 w_fused.size * w_fused.dtype.itemsize)
    else:
        tb = int(batch_tile)
        if tb >= B:
            tb = B
        else:
            # Second-to-last block dim must be a multiple of 8 (or the full B).
            tb = min(B, max(8, (tb // 8) * 8))
    grid = (pl.cdiv(B, tb),)

    vmem_limit = int(_vmem_capacity_bytes() * 7 // 8)

    return pl.pallas_call(
        _gnn_decoder_kernel,
        out_shape=jax.ShapeDtypeStruct((B, D), Q.dtype),
        grid_spec=pltpu.PrefetchScalarGridSpec(
            num_scalar_prefetch=0,
            grid=grid,
            in_specs=[
                pl.BlockSpec((tb, D), lambda i: (i, 0)),         # Q
                pl.BlockSpec((tb, N, D), lambda i: (i, 0, 0)),   # V (unpadded)
                pl.BlockSpec((tb, N), lambda i: (i, 0)),         # adj
                pl.BlockSpec((tb, N), lambda i: (i, 0)),         # s_mask
                # Constant-index resident fused weight (revisited block =>
                # fetched once, reused across all grid steps).
                pl.BlockSpec((2 * D, D), lambda i: (0, 0)),      # fused W
            ],
            out_specs=pl.BlockSpec((tb, D), lambda i: (i, 0)),
        ),
        compiler_params=pltpu.CompilerParams(
            dimension_semantics=("parallel",),
            vmem_limit_bytes=vmem_limit),
    )(Q, V, adj, s_mask, w_fused)


def gnn_decoder_reference(Q, K, V, adj, s_mask, Wr0, Wr1):
    """Pure-JAX reference mirroring the PyTorch forward."""
    del K
    a = jax.nn.softmax(adj.astype(jnp.float32), axis=-1)          # (B, N)
    V0 = V @ Wr0.T                                                 # (B, N, D)
    V1 = V @ Wr1.T
    s = s_mask.astype(jnp.float32)[..., None]                      # (B, N, 1)
    Vm = V0 * s + V1 * (1.0 - s)
    ctx = jnp.einsum("bn,bnd->bd", a, Vm)
    return Q + ctx


def _run_case(B, N, D, act_dtype, tol):
    key = jax.random.PRNGKey(0)
    kq, kk, kv, kadj, kmask, kw0, kw1 = jax.random.split(key, 7)

    Q = jax.random.normal(kq, (B, D), dtype=jnp.float32).astype(act_dtype)
    K = jax.random.normal(kk, (B, N, D), dtype=jnp.float32).astype(act_dtype)
    V = jax.random.normal(kv, (B, N, D), dtype=jnp.float32).astype(act_dtype)
    adj = jax.random.normal(kadj, (B, N), dtype=jnp.float32)
    s_mask = (jax.random.uniform(kmask, (B, N)) > 0.5).astype(jnp.float32)

    # Deterministic weights for the two bias-free linears, PyTorch (out, in)
    # layout, kaiming-style uniform bound 1/sqrt(D).
    bound = 1.0 / np.sqrt(D)
    Wr0 = jax.random.uniform(kw0, (D, D), minval=-bound, maxval=bound,
                             dtype=jnp.float32)
    Wr1 = jax.random.uniform(kw1, (D, D), minval=-bound, maxval=bound,
                             dtype=jnp.float32)

    out = jax.block_until_ready(gnn_decoder(Q, K, V, adj, s_mask, Wr0, Wr1))
    ref = jax.block_until_ready(
        gnn_decoder_reference(Q, K, V, adj, s_mask, Wr0, Wr1))

    assert out.shape == (B, D), out.shape
    np.testing.assert_allclose(np.asarray(out, dtype=np.float32),
                               np.asarray(ref, dtype=np.float32),
                               rtol=tol, atol=tol)


if __name__ == "__main__":
    # 1) Tiny-batch f32 case (B, N, D) = (2, 8, 32): single-step grid, tb = B.
    _run_case(B=2, N=8, D=32, act_dtype=jnp.float32, tol=1e-5)
    # 2) Non-divisible batch: multi-step parallel grid + partial last tile.
    _run_case(B=20, N=8, D=32, act_dtype=jnp.float32, tol=1e-5)
    # 3) bf16 storage of Q/K/V (halves HBM traffic of the dominant V stream),
    #    f32 accumulation inside the kernel.
    _run_case(B=20, N=8, D=32, act_dtype=jnp.bfloat16, tol=3e-2)
    print("KERNEL_OK")
</pallas_src>

<mosaic_0001>
module attributes {stable_mosaic.version = 11 : i64} {
  func.func @_gnn_decoder_kernel(%arg0: i32, %arg1: memref<2x32xf32, #tpu.memory_space<vmem>>, %arg2: memref<2x8x32xf32, #tpu.memory_space<vmem>>, %arg3: memref<2x8xf32, #tpu.memory_space<vmem>>, %arg4: memref<2x8xf32, #tpu.memory_space<vmem>>, %arg5: memref<64x32xf32, #tpu.memory_space<vmem>>, %arg6: memref<2x32xf32, #tpu.memory_space<vmem>>) attributes {dimension_semantics = [#tpu.dimension_semantics<parallel>], iteration_bounds = array<i64: 1>, scalar_prefetch = 0 : i64, scratch_operands = 0 : i64, tpu.core_type = #tpu.core_type<tc>, window_params = [{transform_indices = @transform_0, window_bounds = array<i64: 2, 32>}, {transform_indices = @transform_1, window_bounds = array<i64: 2, 8, 32>}, {transform_indices = @transform_2, window_bounds = array<i64: 2, 8>}, {transform_indices = @transform_3, window_bounds = array<i64: 2, 8>}, {pipeline_mode = #tpu.pipeline_mode<synchronous>, transform_indices = @transform_4, window_bounds = array<i64: 64, 32>}, {transform_indices = @transform_5, window_bounds = array<i64: 2, 32>}]} {
    %c0 = arith.constant 0 : index
    %c0_0 = arith.constant 0 : index
    %0 = vector.load %arg3[%c0, %c0_0] : memref<2x8xf32, #tpu.memory_space<vmem>>, vector<2x8xf32>
    %c0_1 = arith.constant 0 : index
    %c0_2 = arith.constant 0 : index
    %1 = vector.load %arg4[%c0_1, %c0_2] : memref<2x8xf32, #tpu.memory_space<vmem>>, vector<2x8xf32>
    %cst = arith.constant dense<0xFF800000> : vector<2xf32>
    %2 = vector.multi_reduction <maximumf>, %0, %cst [1] : vector<2x8xf32> to vector<2xf32>
    %3 = vector.shape_cast %2 : vector<2xf32> to vector<2x1xf32>
    %4 = vector.broadcast %3 : vector<2x1xf32> to vector<2x8xf32>
    %5 = arith.subf %0, %4 : vector<2x8xf32>
    %6 = math.exp %5 : vector<2x8xf32>
    %cst_3 = arith.constant dense<0.000000e+00> : vector<2xf32>
    %7 = vector.multi_reduction <add>, %6, %cst_3 [1] : vector<2x8xf32> to vector<2xf32>
    %8 = vector.shape_cast %7 : vector<2xf32> to vector<2x1xf32>
    %9 = tpu.reciprocal %8 : vector<2x1xf32> -> vector<2x1xf32>
    %10 = vector.broadcast %9 : vector<2x1xf32> to vector<2x8xf32>
    %11 = arith.mulf %6, %10 : vector<2x8xf32>
    %12 = arith.mulf %11, %1 : vector<2x8xf32>
    %13 = arith.subf %11, %12 : vector<2x8xf32>
    %c0_4 = arith.constant 0 : index
    %c0_5 = arith.constant 0 : index
    %c0_6 = arith.constant 0 : index
    %14 = vector.load %arg2[%c0_4, %c0_5, %c0_6] : memref<2x8x32xf32, #tpu.memory_space<vmem>>, vector<2x8x32xf32>
    %15 = vector.shape_cast %12 : vector<2x8xf32> to vector<2x8x1xf32>
    %16 = vector.broadcast %15 : vector<2x8x1xf32> to vector<2x8x32xf32>
    %17 = arith.mulf %16, %14 : vector<2x8x32xf32>
    %cst_7 = arith.constant dense<0.000000e+00> : vector<2x32xf32>
    %18 = vector.multi_reduction <add>, %17, %cst_7 [1] : vector<2x8x32xf32> to vector<2x32xf32>
    %19 = vector.shape_cast %13 : vector<2x8xf32> to vector<2x8x1xf32>
    %20 = vector.broadcast %19 : vector<2x8x1xf32> to vector<2x8x32xf32>
    %21 = arith.mulf %20, %14 : vector<2x8x32xf32>
    %cst_8 = arith.constant dense<0.000000e+00> : vector<2x32xf32>
    %22 = vector.multi_reduction <add>, %21, %cst_8 [1] : vector<2x8x32xf32> to vector<2x32xf32>
    %23 = tpu.concatenate %18, %22 in 1 : vector<2x32xf32>, vector<2x32xf32> -> vector<2x64xf32>
    %c0_9 = arith.constant 0 : index
    %c0_10 = arith.constant 0 : index
    %24 = vector.load %arg5[%c0_9, %c0_10] : memref<64x32xf32, #tpu.memory_space<vmem>>, vector<64x32xf32>
    %cst_11 = arith.constant dense<0.000000e+00> : vector<2x32xf32>
    %25 = tpu.matmul %23, %24, %cst_11 {dimension_numbers = #tpu.dot_dimension_numbers<[1], [0], [0], [1], [0, 0, 1, 1], [], []>} : vector<2x64xf32>, vector<64x32xf32>, vector<2x32xf32> -> vector<2x32xf32>
    %c0_12 = arith.constant 0 : index
    %c0_13 = arith.constant 0 : index
    %26 = vector.load %arg1[%c0_12, %c0_13] : memref<2x32xf32, #tpu.memory_space<vmem>>, vector<2x32xf32>
    %27 = arith.addf %26, %25 : vector<2x32xf32>
    %c0_14 = arith.constant 0 : index
    %c0_15 = arith.constant 0 : index
    %28 = vector.load %arg6[%c0_14, %c0_15] : memref<2x32xf32, #tpu.memory_space<vmem>>, vector<2x32xf32>
    tpu.vector_store %arg6[%c0_14, %c0_15], %27 {strides = array<i32>} : memref<2x32xf32, #tpu.memory_space<vmem>>, vector<2x32xf32>,
    return
  }
  func.func @transform_0(%arg0: i32) -> (i32, i32) {
    %c0_i32 = arith.constant 0 : i32
    %c0_i32_0 = arith.constant 0 : i32
    return %arg0, %c0_i32 : i32, i32
  }
  func.func @transform_1(%arg0: i32) -> (i32, i32, i32) {
    %c0_i32 = arith.constant 0 : i32
    %c0_i32_0 = arith.constant 0 : i32
    %c0_i32_1 = arith.constant 0 : i32
    return %arg0, %c0_i32, %c0_i32_0 : i32, i32, i32
  }
  func.func @transform_2(%arg0: i32) -> (i32, i32) {
    %c0_i32 = arith.constant 0 : i32
    %c0_i32_0 = arith.constant 0 : i32
    return %arg0, %c0_i32 : i32, i32
  }
  func.func @transform_3(%arg0: i32) -> (i32, i32) {
    %c0_i32 = arith.constant 0 : i32
    %c0_i32_0 = arith.constant 0 : i32
    return %arg0, %c0_i32 : i32, i32
  }
  func.func @transform_4(%arg0: i32) -> (i32, i32) {
    %c0_i32 = arith.constant 0 : i32
    %c0_i32_0 = arith.constant 0 : i32
    %c0_i32_1 = arith.constant 0 : i32
    return %c0_i32, %c0_i32_0 : i32, i32
  }
  func.func @transform_5(%arg0: i32) -> (i32, i32) {
    %c0_i32 = arith.constant 0 : i32
    %c0_i32_0 = arith.constant 0 : i32
    return %arg0, %c0_i32 : i32, i32
  }
}

</mosaic_0001>

<bundles_post_ra>
// kernel: tpu_custom_call.1
= control target key start
LH: loop header
LB: loop body
LE: loop exit
PB: predicated region body
PF: predicated region fallthrough
CT: control target
= control target key end

     0   :  { %vm23_vm0 = vcmask 58368   ;;  %s294_s0 = inlined_call_operand.vmem [shape: f32[2,32], index: 0, kind: input, shape index: {}]   ;;  %s295_s1 = inlined_call_operand.vmem [shape: f32[2,8,32], index: 1, kind: input, shape index: {}]   ;;  %s296_s2 = inlined_call_operand.vmem [shape: f32[2,8], index: 2, kind: input, shape index: {}]   ;;  %s297_s3 = inlined_call_operand.vmem [shape: f32[2,8], index: 3, kind: input, shape index: {}]   ;;  %s298_s4 = inlined_call_operand.vmem [shape: f32[64,32], index: 4, kind: input, shape index: {}]   ;;  %s299_s5 = inlined_call_operand.hbm [shape: f32[2,32], index: 5, kind: output, shape index: {}]  }
   0x1   :  { %v21_v0 = vld [vmem:[%s296_s2] sm:$0x3] }
   0x2   :  { %10 = vsyncpa [#allocation3], 0  ;;  %v24_v1 = vsel %vm23_vm0, %v21_v0, -inf  ;;  %v53_v7 = vlaneseq  ;;  %v22_v19 = vld [vmem:[%s297_s3] sm:$0x3]  ;;  %vm68_vm5 = vcmask 261120  }
   0x3   :  { %25 = vmax.xlane.f32.xlu0 %v24_v1  ;;  %v50_v28 = vld [vmem:[%s295_s1] sm:$0xff]  ;;  %v51_v34 = vld [vmem:[%s295_s1 + $0x8] sm:$0xff]  ;;  %v132_v45 = vld [vmem:[%s298_s4 + $0x38] sm:$0xff]  ;;  %vm115_vm6 = vcmask 1041409   ;;  %s213_s12 = smov 32   ;;  %vm133_vm7 = vcmask 523264  }
   0x4   :  { %v54_v8 = vshrl.u32 %v53_v7, 7  ;;  %v131_v46 = vld [vmem:[%s298_s4 + $0x30] sm:$0xff]  ;;  %145 = vmatpush.msra.mxu0 %v132_v45  ;;  %v130_v48 = vld [vmem:[%s298_s4 + $0x28] sm:$0xff]  ;;  %v129_v51 = vld [vmem:[%s298_s4 + $0x20] sm:$0xff]  ;;  %s214_s17 = smov [#allocation2]   ;;  %s168_s20 = sshll.u32 %s299_s5, 4  ;;  %s169_s20 = int_to_ptr.hbm [resolvable:$true] %s168_s20 }
   0x5   :  { %v128_v53 = vld [vmem:[%s298_s4 + $0x18] sm:$0xff]  ;;  %v127_v56 = vld [vmem:[%s298_s4 + $0x10] sm:$0xff]  ;;  %v126_v58 = vld [vmem:[%s298_s4 + $0x8] sm:$0xff]  ;;  %s166_s18 = sshll.u32 %s214_s17, 4  ;;  %vm159_vm8 = vcmask 254976   ;;  %s167_s18 = int_to_ptr.vmem [resolvable:$true] %s166_s18 }
   0x6   :  { %181 = vset.pattern.permute.xlu2 %v54_v8  ;;  %180 = vset.pattern.permute.xlu1 %v54_v8 }
   0x7   :  { %182 = vset.pattern.permute.xlu0 %v54_v8  ;;  %146 = vmatpush.msra.mxu0 %v131_v46 }
   0x9   :  { %147 = vmatpush.msra.mxu0 %v130_v48 }
   0xb   :  { %148 = vmatpush.msra.mxu0 %v129_v51 }
   0xd   :  { %149 = vmatpush.msra.mxu0 %v128_v53 }
   0xf   :  { %150 = vmatpush.msra.mxu0 %v127_v56 }
  0x11   :  { %151 = vmatpush.msra.mxu0 %v126_v58 }
  0x76   :  { %v26_v2 = vpop.xlane.xlu0 %25 }
  0x77   :  { %v27_v3 = vsub.f32 %v21_v0, %v26_v2 }
  0x79   :  { %v28_v4 = vmul.f32 1.442695, %v27_v3 }
  0x7b   :  { %183 = vpow2.f32 %v28_v4 }
  0x81   :  { %v184_v5 = vpop.eup %183 }
  0x82   :  { %v30_v6 = vsel %vm23_vm0, %v184_v5, 0.0 }
  0x83   :  { %31 = vadd.xlane.f32.xlu0 %v30_v6 }
  0xf6   :  { %v32_v9 = vpop.xlane.xlu0 %31 }
  0xf7   :  { %185 = vrcp.f32 %v32_v9  ;;  %v44_v13 = vand.u32 2147483648, %v32_v9  ;;  %v42_v15 = vand.u32 2147483647, %v32_v9  ;;  %vm38_vm2 = vweird.f32 %v32_v9 }
  0xf9   :  { %v45_v17 = vor.u32 1.1754944e-38, %v44_v13  ;;  %vm43_vm4 = vcmp.eq.f32.partialorder %v42_v15, 8.507059e+37 }
  0xfd   :  { %v186_v10 = vpop.eup %185 }
  0xfe   :  { %v34_v11 = vmul.f32 %v186_v10, %v32_v9  ;;  %vm39_vm1 = vweird.f32 %v186_v10 }
  0xff   :  { %vm40_vm3 = vmor %vm38_vm2, %vm39_vm1 }
 0x100   :  { %v35_v12 = vsub.f32 1.0, %v34_v11  ;;  %v125_v11 = vld [vmem:[%s298_s4] sm:$0xff] }
 0x101   :  { %152 = vmatpush.msra.mxu0 %v125_v11 }
 0x102   :  { %v36_v14 = vmul.f32 %v186_v10, %v35_v12 }
 0x104   :  { %v37_v16 = vadd.f32 %v186_v10, %v36_v14  ;;  %v157_v14 = vld [vmem:[%s294_s0] sm:$0x3] }
 0x106   :  { %v41_v18 = vsel %vm40_vm3, %v186_v10, %v37_v16 }
 0x107   :  { %v46_v20 = vsel %vm43_vm4, %v45_v17, %v41_v18 }
 0x108   :  { %v47_v21 = vmul.f32 %v184_v5, %v46_v20 }
 0x10a   :  { %v48_v22 = vmul.f32 %v47_v21, %v22_v19 }
 0x10c   :  { %v52_v23 = vperm.slane %v48_v22, 0  ;;  %v49_v24 = vsub.f32 %v47_v21, %v48_v22  ;;  %v59_v26 = vperm.slane %v48_v22, 1 }
 0x10e   :  { %57 = vperm.xlu2 %181, %v52_v23   ;;  %v83_v25 = vperm.slane %v49_v24, 0  ;;  %v90_v27 = vperm.slane %v49_v24, 1 }
 0x110   :  { %88 = vperm.xlu1 %180, %v83_v25  }
 0x116   :  { %64 = vperm.xlu2 %181, %v59_v26  }
 0x118   :  { %95 = vperm.xlu1 %180, %v90_v27  }
 0x168   :  { %v58_v29 = vpop.permute.xlu2 %57 }
 0x169   :  { %v66_v30 = vmul.f32 %v58_v29, %v50_v28 }
 0x16b   :  { %v69_v31 = vsel %vm68_vm5, %v66_v30, 0.0 }
 0x16c   :  { %v70_v32 = vrot.slane %v69_v31, 4 }
 0x16e   :  { %v71_v33 = vadd.f32 %v70_v32, %v69_v31 }
 0x170   :  { %v65_v35 = vpop.permute.xlu2 %64  ;;  %v72_v37 = vrot.slane %v71_v33, 2 }
 0x171   :  { %v67_v36 = vmul.f32 %v65_v35, %v51_v34 }
 0x172   :  { %v73_v40 = vadd.f32 %v72_v37, %v71_v33 }
 0x173   :  { %v76_v38 = vsel %vm68_vm5, %v67_v36, 0.0 }
 0x174   :  { %v77_v39 = vrot.slane %v76_v38, 4  ;;  %v74_v43 = vrot.slane %v73_v40, 1 }
 0x176   :  { %v78_v41 = vadd.f32 %v77_v39, %v76_v38  ;;  %v75_v49 = vadd.f32 %v74_v43, %v73_v40 }
 0x178   :  { %v79_v42 = vrot.slane %v78_v41, 2 }
 0x17a   :  { %v80_v44 = vadd.f32 %v79_v42, %v78_v41 }
 0x17c   :  { %v81_v47 = vrot.slane %v80_v44, 1 }
 0x17e   :  { %v82_v50 = vadd.f32 %v81_v47, %v80_v44 }
 0x180   :  { %v116_v52 = vsel %vm115_vm6, %v82_v50, %v75_v49 }
 0x182   :  { %v89_v54 = vpop.permute.xlu1 %88 }
 0x183   :  { %v97_v55 = vmul.f32 %v89_v54, %v50_v28 }
 0x185   :  { %v99_v57 = vsel %vm68_vm5, %v97_v55, 0.0 }
 0x186   :  { %v100_v59 = vrot.slane %v99_v57, 4 }
 0x188   :  { %v101_v60 = vadd.f32 %v100_v59, %v99_v57 }
 0x18a   :  { %v96_v61 = vpop.permute.xlu1 %95  ;;  %v102_v63 = vrot.slane %v101_v60, 2 }
 0x18b   :  { %v98_v62 = vmul.f32 %v96_v61, %v51_v34 }
 0x18c   :  { %v103_v2 = vadd.f32 %v102_v63, %v101_v60 }
 0x18d   :  { %v106_v0 = vsel %vm68_vm5, %v98_v62, 0.0 }
 0x18e   :  { %v107_v1 = vrot.slane %v106_v0, 4  ;;  %v104_v5 = vrot.slane %v103_v2, 1 }
 0x190   :  { %v108_v3 = vadd.f32 %v107_v1, %v106_v0  ;;  %v105_v8 = vadd.f32 %v104_v5, %v103_v2 }
 0x192   :  { %v109_v4 = vrot.slane %v108_v3, 2 }
 0x194   :  { %v110_v6 = vadd.f32 %v109_v4, %v108_v3 }
 0x196   :  { %v111_v7 = vrot.slane %v110_v6, 1 }
 0x198   :  { %v112_v9 = vadd.f32 %v111_v7, %v110_v6 }
 0x19a   :  { %v120_v10 = vsel %vm115_vm6, %v112_v9, %v105_v8 }
 0x19b   :  { %121 = vrot.lane.b32.xlu0 %v120_v10, %s213_s12 }
 0x20d   :  { %v122_v12 = vpop.permute.xlu0 %121 }
 0x20e   :  { %v124_v13 = vsel %vm68_vm5, %v116_v52, %v122_v12 }
 0x20f   :  { %177 = vmatmul.msk.f32.vlgmr.msra.gmra.mxu0 %vm133_vm7, %v124_v13 }
 0x28c   :  { %v154_v15 = vpop.f32.mrf.mxu0 }
 0x28d   :  { %v158_v16 = vadd.f32 %v157_v14, %v154_v15 }
 0x28f   :  { %160 = vst.msk [vmem:[#allocation2] sm:$0x3] %vm159_vm8, %v158_v16 }
 0x290   :  { %171 = dma.vmem_to_hbm [thread:$0]  %s167_s18, 32, %s169_s20, [#allocation3]  }
 0x291   :  { %211 = dma.done.wait [#allocation3], 32  }
 0x292   :  { %212 = vsyncadd [#allocation3], 4294967264 }
 0x293   :  { %176 = vsyncpa [#allocation3], 1 }

</bundles_post_ra>
